<compile_context>
chip_gen: v5e
topology: v5e:2x2
jax: 0.10.0
libtpu: 0.0.40
codegen_flags: <defaults>
</compile_context>

<pallas_src>
import functools

import jax
import jax.numpy as jnp
from jax.experimental import pallas as pl
from jax.experimental.pallas import tpu as pltpu


LANE = 128   # TPU lane width (last-dim tiling unit)
SUBLANE = 8  # sublane tiling unit (second-to-last dim)


def _round_up(x, m):
    return ((x + m - 1) // m) * m


def _mlp_kernel(x_ref, w1_ref, b1_ref, w2_ref, b2_ref, w3_ref, b3_ref, o_ref):
    # Fused forward: relu(x@W1+b1) -> relu(.@W2+b2) -> .@W3+b3  (f32 accum)
    x = x_ref[...]
    h1 = jnp.dot(x, w1_ref[...], preferred_element_type=jnp.float32) + b1_ref[...]
    h1 = jnp.maximum(h1, 0.0)
    h2 = jnp.dot(h1, w2_ref[...], preferred_element_type=jnp.float32) + b2_ref[...]
    h2 = jnp.maximum(h2, 0.0)
    o_ref[...] = (
        jnp.dot(h2, w3_ref[...], preferred_element_type=jnp.float32) + b3_ref[...]
    ).astype(o_ref.dtype)


def prepare_params(params):
    """One-time weight prep (no per-call cost):
      * transpose (out, in) -> (in, out) so the kernel does plain row-major
        MXU matmuls,
      * zero-pad the hidden width and the final output width to multiples of
        128 so all intermediates and the output are lane-dense,
      * make biases 2D [1, out] for broadcast."""
    hidden = params["fc1_w"].shape[0]
    n_actions = params["out_w"].shape[0]
    h_pad = _round_up(max(hidden, LANE), LANE)
    n_pad = _round_up(max(n_actions, LANE), LANE)

    w1 = jnp.asarray(params["fc1_w"]).T                      # [D, H]
    w2 = jnp.asarray(params["fc2_w"]).T                      # [H, H]
    w3 = jnp.asarray(params["out_w"]).T                      # [H, A]

    # Zero padding keeps the math exact: padded hidden units get bias 0 and
    # weight 0 everywhere, so they stay 0 through ReLU and contribute nothing.
    w1 = jnp.pad(w1, ((0, 0), (0, h_pad - hidden)))                       # [D, Hp]
    w2 = jnp.pad(w2, ((0, h_pad - hidden), (0, h_pad - hidden)))          # [Hp, Hp]
    w3 = jnp.pad(w3, ((0, h_pad - hidden), (0, n_pad - n_actions)))       # [Hp, Np]

    b1 = jnp.pad(jnp.asarray(params["fc1_b"]), (0, h_pad - hidden))[None, :]
    b2 = jnp.pad(jnp.asarray(params["fc2_b"]), (0, h_pad - hidden))[None, :]
    b3 = jnp.pad(jnp.asarray(params["out_b"]), (0, n_pad - n_actions))[None, :]

    return dict(w1=w1, b1=b1, w2=w2, b2=b2, w3=w3, b3=b3, n_actions=n_actions)


@functools.partial(jax.jit, static_argnames=("n_actions",))
def _forward_padded(x, w1, b1, w2, b2, w3, b3, *, n_actions):
    B, D = x.shape
    H_PAD = w1.shape[1]
    N_PAD = w3.shape[1]

    # Batch tile: up to 1024 rows (amortizes per-grid-step overhead), sublane
    # aligned; small batches collapse to a single grid step.
    TB = min(1024, _round_up(B, SUBLANE))
    B_pad = _round_up(B, TB)
    if B_pad != B:
        x = jnp.pad(x, ((0, B_pad - B), (0, 0)))
    grid = (B_pad // TB,)

    # VMEM budget: double-buffered x/out tiles + resident weights/biases +
    # headroom for the h1/h2 intermediates.
    tile_bytes = 2 * (TB * D + TB * N_PAD) * 4
    weight_bytes = (D * H_PAD + H_PAD * H_PAD + H_PAD * N_PAD
                    + 2 * H_PAD + N_PAD) * 4
    interm_bytes = 2 * TB * H_PAD * 4
    vmem_limit = min(64 * 1024 * 1024,
                     max(16 * 1024 * 1024,
                         2 * (tile_bytes + weight_bytes + interm_bytes)))

    cost = pl.CostEstimate(
        flops=2 * B_pad * (D * H_PAD + H_PAD * H_PAD + H_PAD * N_PAD),
        transcendentals=0,
        bytes_accessed=B_pad * D * 4 + B_pad * N_PAD * 4 + weight_bytes,
    )

    const = lambda i: (0, 0)  # weights/biases stay resident across grid steps

    out = pl.pallas_call(
        _mlp_kernel,
        out_shape=jax.ShapeDtypeStruct((B_pad, N_PAD), jnp.float32),
        grid=grid,
        in_specs=[
            pl.BlockSpec((TB, D), lambda i: (i, 0)),      # x: tiled over batch
            pl.BlockSpec((D, H_PAD), const),              # W1
            pl.BlockSpec((1, H_PAD), const),              # b1
            pl.BlockSpec((H_PAD, H_PAD), const),          # W2
            pl.BlockSpec((1, H_PAD), const),              # b2
            pl.BlockSpec((H_PAD, N_PAD), const),          # W3 (lane-padded)
            pl.BlockSpec((1, N_PAD), const),              # b3 (lane-padded)
        ],
        out_specs=pl.BlockSpec((TB, N_PAD), lambda i: (i, 0)),
        compiler_params=pltpu.CompilerParams(
            dimension_semantics=("parallel",),
            vmem_limit_bytes=int(vmem_limit),
        ),
        cost_estimate=cost,
    )(x, w1, b1, w2, b2, w3, b3)

    return out[:B, :n_actions]


def qlinearnet_forward(x, prepared):
    """x: [B, input_dim] float32. prepared: output of prepare_params()."""
    return _forward_padded(
        x,
        prepared["w1"], prepared["b1"],
        prepared["w2"], prepared["b2"],
        prepared["w3"], prepared["b3"],
        n_actions=prepared["n_actions"],
    )


def init_params(key, input_dim, hidden_dim, n_actions):
    """Deterministic init mimicking nn.Linear's uniform(-1/sqrt(fan_in), ...)."""
    ks = jax.random.split(key, 6)

    def lin(kw, kb, fan_in, fan_out):
        bound = 1.0 / jnp.sqrt(fan_in)
        w = jax.random.uniform(kw, (fan_out, fan_in), jnp.float32, -bound, bound)
        b = jax.random.uniform(kb, (fan_out,), jnp.float32, -bound, bound)
        return w, b

    fc1_w, fc1_b = lin(ks[0], ks[1], input_dim, hidden_dim)
    fc2_w, fc2_b = lin(ks[2], ks[3], hidden_dim, hidden_dim)
    out_w, out_b = lin(ks[4], ks[5], hidden_dim, n_actions)
    return dict(
        fc1_w=fc1_w, fc1_b=fc1_b,
        fc2_w=fc2_w, fc2_b=fc2_b,
        out_w=out_w, out_b=out_b,
    )


def reference_forward(x, params):
    h1 = jnp.maximum(x @ params["fc1_w"].T + params["fc1_b"], 0.0)
    h2 = jnp.maximum(h1 @ params["fc2_w"].T + params["fc2_b"], 0.0)
    return h2 @ params["out_w"].T + params["out_b"]


if __name__ == "__main__":
    input_dim, hidden_dim, n_actions = 16, 32, 4
    batch = 2

    key = jax.random.PRNGKey(0)
    kx, kp = jax.random.split(key)
    x = jax.random.normal(kx, (batch, input_dim), jnp.float32)
    params = init_params(kp, input_dim, hidden_dim, n_actions)

    prepared = prepare_params(params)           # one-time weight transpose/pad
    out = qlinearnet_forward(x, prepared)
    out = jax.block_until_ready(out)

    ref = reference_forward(x, params)
    assert out.shape == (batch, n_actions)
    assert jnp.allclose(out, ref, atol=1e-5, rtol=1e-5)

    # Also exercise a batch large enough to need padding to the batch tile.
    xb = jax.random.normal(kx, (600, input_dim), jnp.float32)
    outb = jax.block_until_ready(qlinearnet_forward(xb, prepared))
    refb = reference_forward(xb, params)
    assert outb.shape == (600, n_actions)
    assert jnp.allclose(outb, refb, atol=1e-5, rtol=1e-5)

    print("KERNEL_OK")
</pallas_src>

<mosaic_0001>
module attributes {stable_mosaic.version = 11 : i64} {
  func.func @_mlp_kernel(%arg0: i32, %arg1: memref<8x16xf32, #tpu.memory_space<vmem>>, %arg2: memref<16x128xf32, #tpu.memory_space<vmem>>, %arg3: memref<1x128xf32, #tpu.memory_space<vmem>>, %arg4: memref<128x128xf32, #tpu.memory_space<vmem>>, %arg5: memref<1x128xf32, #tpu.memory_space<vmem>>, %arg6: memref<128x128xf32, #tpu.memory_space<vmem>>, %arg7: memref<1x128xf32, #tpu.memory_space<vmem>>, %arg8: memref<8x128xf32, #tpu.memory_space<vmem>>) attributes {dimension_semantics = [#tpu.dimension_semantics<parallel>], iteration_bounds = array<i64: 1>, scalar_prefetch = 0 : i64, scratch_operands = 0 : i64, tpu.core_type = #tpu.core_type<tc>, window_params = [{transform_indices = @transform_0, window_bounds = array<i64: 8, 16>}, {pipeline_mode = #tpu.pipeline_mode<synchronous>, transform_indices = @transform_1, window_bounds = array<i64: 16, 128>}, {pipeline_mode = #tpu.pipeline_mode<synchronous>, transform_indices = @transform_2, window_bounds = array<i64: 1, 128>}, {pipeline_mode = #tpu.pipeline_mode<synchronous>, transform_indices = @transform_3, window_bounds = array<i64: 128, 128>}, {pipeline_mode = #tpu.pipeline_mode<synchronous>, transform_indices = @transform_4, window_bounds = array<i64: 1, 128>}, {pipeline_mode = #tpu.pipeline_mode<synchronous>, transform_indices = @transform_5, window_bounds = array<i64: 128, 128>}, {pipeline_mode = #tpu.pipeline_mode<synchronous>, transform_indices = @transform_6, window_bounds = array<i64: 1, 128>}, {transform_indices = @transform_7, window_bounds = array<i64: 8, 128>}]} {
    %c0 = arith.constant 0 : index
    %c0_0 = arith.constant 0 : index
    %0 = vector.load %arg1[%c0, %c0_0] : memref<8x16xf32, #tpu.memory_space<vmem>>, vector<8x16xf32>
    %c0_1 = arith.constant 0 : index
    %c0_2 = arith.constant 0 : index
    %1 = vector.load %arg2[%c0_1, %c0_2] : memref<16x128xf32, #tpu.memory_space<vmem>>, vector<16x128xf32>
    %cst = arith.constant dense<0.000000e+00> : vector<8x128xf32>
    %2 = tpu.matmul %0, %1, %cst {dimension_numbers = #tpu.dot_dimension_numbers<[1], [0], [0], [1], [0, 0, 1, 1], [], []>} : vector<8x16xf32>, vector<16x128xf32>, vector<8x128xf32> -> vector<8x128xf32>
    %c0_3 = arith.constant 0 : index
    %c0_4 = arith.constant 0 : index
    %3 = vector.load %arg3[%c0_3, %c0_4] : memref<1x128xf32, #tpu.memory_space<vmem>>, vector<1x128xf32>
    %4 = vector.broadcast %3 : vector<1x128xf32> to vector<8x128xf32>
    %5 = arith.addf %2, %4 : vector<8x128xf32>
    %cst_5 = arith.constant 0.000000e+00 : f32
    %6 = vector.broadcast %cst_5 : f32 to vector<8x128xf32>
    %7 = arith.maximumf %5, %6 : vector<8x128xf32>
    %c0_6 = arith.constant 0 : index
    %c0_7 = arith.constant 0 : index
    %8 = vector.load %arg4[%c0_6, %c0_7] : memref<128x128xf32, #tpu.memory_space<vmem>>, vector<128x128xf32>
    %cst_8 = arith.constant dense<0.000000e+00> : vector<8x128xf32>
    %9 = tpu.matmul %7, %8, %cst_8 {dimension_numbers = #tpu.dot_dimension_numbers<[1], [0], [0], [1], [0, 0, 1, 1], [], []>} : vector<8x128xf32>, vector<128x128xf32>, vector<8x128xf32> -> vector<8x128xf32>
    %c0_9 = arith.constant 0 : index
    %c0_10 = arith.constant 0 : index
    %10 = vector.load %arg5[%c0_9, %c0_10] : memref<1x128xf32, #tpu.memory_space<vmem>>, vector<1x128xf32>
    %11 = vector.broadcast %10 : vector<1x128xf32> to vector<8x128xf32>
    %12 = arith.addf %9, %11 : vector<8x128xf32>
    %cst_11 = arith.constant 0.000000e+00 : f32
    %13 = vector.broadcast %cst_11 : f32 to vector<8x128xf32>
    %14 = arith.maximumf %12, %13 : vector<8x128xf32>
    %c0_12 = arith.constant 0 : index
    %c0_13 = arith.constant 0 : index
    %15 = vector.load %arg6[%c0_12, %c0_13] : memref<128x128xf32, #tpu.memory_space<vmem>>, vector<128x128xf32>
    %cst_14 = arith.constant dense<0.000000e+00> : vector<8x128xf32>
    %16 = tpu.matmul %14, %15, %cst_14 {dimension_numbers = #tpu.dot_dimension_numbers<[1], [0], [0], [1], [0, 0, 1, 1], [], []>} : vector<8x128xf32>, vector<128x128xf32>, vector<8x128xf32> -> vector<8x128xf32>
    %c0_15 = arith.constant 0 : index
    %c0_16 = arith.constant 0 : index
    %17 = vector.load %arg7[%c0_15, %c0_16] : memref<1x128xf32, #tpu.memory_space<vmem>>, vector<1x128xf32>
    %18 = vector.broadcast %17 : vector<1x128xf32> to vector<8x128xf32>
    %19 = arith.addf %16, %18 : vector<8x128xf32>
    %c0_17 = arith.constant 0 : index
    %c0_18 = arith.constant 0 : index
    %20 = vector.load %arg8[%c0_17, %c0_18] : memref<8x128xf32, #tpu.memory_space<vmem>>, vector<8x128xf32>
    tpu.vector_store %arg8[%c0_17, %c0_18], %19 {strides = array<i32>} : memref<8x128xf32, #tpu.memory_space<vmem>>, vector<8x128xf32>,
    return
  }
  func.func @transform_0(%arg0: i32) -> (i32, i32) {
    %c0_i32 = arith.constant 0 : i32
    %c0_i32_0 = arith.constant 0 : i32
    return %arg0, %c0_i32 : i32, i32
  }
  func.func @transform_1(%arg0: i32) -> (i32, i32) {
    %c0_i32 = arith.constant 0 : i32
    %c0_i32_0 = arith.constant 0 : i32
    %c0_i32_1 = arith.constant 0 : i32
    return %c0_i32, %c0_i32_0 : i32, i32
  }
  func.func @transform_2(%arg0: i32) -> (i32, i32) {
    %c0_i32 = arith.constant 0 : i32
    %c0_i32_0 = arith.constant 0 : i32
    %c0_i32_1 = arith.constant 0 : i32
    return %c0_i32, %c0_i32_0 : i32, i32
  }
  func.func @transform_3(%arg0: i32) -> (i32, i32) {
    %c0_i32 = arith.constant 0 : i32
    %c0_i32_0 = arith.constant 0 : i32
    %c0_i32_1 = arith.constant 0 : i32
    return %c0_i32, %c0_i32_0 : i32, i32
  }
  func.func @transform_4(%arg0: i32) -> (i32, i32) {
    %c0_i32 = arith.constant 0 : i32
    %c0_i32_0 = arith.constant 0 : i32
    %c0_i32_1 = arith.constant 0 : i32
    return %c0_i32, %c0_i32_0 : i32, i32
  }
  func.func @transform_5(%arg0: i32) -> (i32, i32) {
    %c0_i32 = arith.constant 0 : i32
    %c0_i32_0 = arith.constant 0 : i32
    %c0_i32_1 = arith.constant 0 : i32
    return %c0_i32, %c0_i32_0 : i32, i32
  }
  func.func @transform_6(%arg0: i32) -> (i32, i32) {
    %c0_i32 = arith.constant 0 : i32
    %c0_i32_0 = arith.constant 0 : i32
    %c0_i32_1 = arith.constant 0 : i32
    return %c0_i32, %c0_i32_0 : i32, i32
  }
  func.func @transform_7(%arg0: i32) -> (i32, i32) {
    %c0_i32 = arith.constant 0 : i32
    %c0_i32_0 = arith.constant 0 : i32
    return %arg0, %c0_i32 : i32, i32
  }
}

</mosaic_0001>

<bundles_post_ra>
// kernel: _forward_padded.1
= control target key start
LH: loop header
LB: loop body
LE: loop exit
PB: predicated region body
PF: predicated region fallthrough
CT: control target
= control target key end

     0   :  { %12 = vsyncpa [#allocation3], 0  ;;  %s347_s0 = inlined_call_operand.vmem [shape: f32[8,16], index: 0, kind: input, shape index: {}]   ;;  %s348_s1 = inlined_call_operand.hbm [shape: f32[16,128], index: 1, kind: input, shape index: {}]   ;;  %s349_s2 = inlined_call_operand.vmem [shape: f32[1,128], index: 2, kind: input, shape index: {}]   ;;  %s350_s3 = inlined_call_operand.hbm [shape: f32[128,128], index: 3, kind: input, shape index: {}]   ;;  %s351_s4 = inlined_call_operand.vmem [shape: f32[1,128], index: 4, kind: input, shape index: {}]   ;;  %s352_s5 = inlined_call_operand.hbm [shape: f32[128,128], index: 5, kind: input, shape index: {}]   ;;  %s353_s6 = inlined_call_operand.vmem [shape: f32[1,128], index: 6, kind: input, shape index: {}]   ;;  %s354_s7 = inlined_call_operand.vmem [shape: f32[8,128], index: 7, kind: output, shape index: {}]  }
   0x1   :  { %13 = vsyncpa [#allocation5], 0  ;;  %s35_s26 = sshll.u32 %s350_s3, 4  ;;  %s278_s27 = smov [#allocation4]   ;;  %s36_s26 = int_to_ptr.hbm [resolvable:$true] %s35_s26 }
   0x2   :  { %s37_s28 = sshll.u32 %s278_s27, 4  ;;  %s20_s8 = sshll.u32 %s348_s1, 4  ;;  %s38_s28 = int_to_ptr.vmem [resolvable:$true] %s37_s28  ;;  %s21_s8 = int_to_ptr.hbm [resolvable:$true] %s20_s8 }
   0x3   :  { %s279_s9 = smov 128   ;;  %s280_s10 = smov 8  }
   0x4   :  { %43 = dma.hbm_to_vmem [thread:$0]  %s36_s26, 2048, %s38_s28, [#allocation5], %s279_s9, %s279_s9, %s280_s10  }
   0x5   :  { %s281_s11 = smov [#allocation2]   ;;  %s50_s15 = sshll.u32 %s352_s5, 4  ;;  %s51_s15 = int_to_ptr.hbm [resolvable:$true] %s50_s15 }
   0x6   :  { %s22_s12 = sshll.u32 %s281_s11, 4  ;;  %s282_s3 = smov [#allocation6]   ;;  %s23_s12 = int_to_ptr.vmem [resolvable:$true] %s22_s12 }
   0x7   :  { %28 = dma.hbm_to_vmem [thread:$0]  %s21_s8, 256, %s23_s12, [#allocation3], %s279_s9, %s279_s9, %s280_s10  }
   0x8   :  { %s52_s16 = sshll.u32 %s282_s3, 4  ;;  %s53_s16 = int_to_ptr.vmem [resolvable:$true] %s52_s16 }
   0x9   :  { %58 = dma.hbm_to_vmem [thread:$0]  %s51_s15, 2048, %s53_s16, [#allocation5], %s279_s9, %s279_s9, %s280_s10  }
   0xa   :  { %274 = dma.done.wait [#allocation3], 256  }
   0xb   :  { %275 = vsyncadd [#allocation3], 4294967040 }
   0xc   :  { %276 = dma.done.wait [#allocation5], 4096  }
   0xd   :  { %277 = vsyncadd [#allocation5], 4294963200  ;;  %v75_v0 = vld [vmem:[#allocation2 + $0x8] sm:$0xff]  ;;  %v74_v1 = vld [vmem:[#allocation2] sm:$0xff]  ;;  %vm80_vm0 = vcmask 130048  }
   0xe   :  { %98 = vmatpush.msra.mxu0 %v75_v0  ;;  %v73_v2 = vld [vmem:[%s347_s0] sm:$0xff]  ;;  %v120_v3 = vld [vmem:[#allocation4 + $0x78] sm:$0xff]  ;;  %v118_v5 = vld [vmem:[#allocation4 + $0x68] sm:$0xff] }
   0xf   :  { %v119_v4 = vld [vmem:[#allocation4 + $0x70] sm:$0xff]  ;;  %125 = vmatpush.msra.mxu1 %v120_v3  ;;  %v117_v6 = vld [vmem:[#allocation4 + $0x60] sm:$0xff]  ;;  %v116_v7 = vld [vmem:[#allocation4 + $0x58] sm:$0xff] }
  0x10   :  { %99 = vmatpush.msra.mxu0 %v74_v1  ;;  %v115_v8 = vld [vmem:[#allocation4 + $0x50] sm:$0xff]  ;;  %v114_v9 = vld [vmem:[#allocation4 + $0x48] sm:$0xff]  ;;  %v113_v10 = vld [vmem:[#allocation4 + $0x40] sm:$0xff] }
  0x11   :  { %193 = vmatmul.msk.f32.vlgmr.msra.gmra.mxu0 %vm80_vm0, %v73_v2  ;;  %126 = vmatpush.msra.mxu1 %v119_v4  ;;  %v112_v11 = vld [vmem:[#allocation4 + $0x38] sm:$0xff]  ;;  %v111_v12 = vld [vmem:[#allocation4 + $0x30] sm:$0xff]  ;;  %v110_v13 = vld [vmem:[#allocation4 + $0x28] sm:$0xff] }
  0x12   :  { %v109_v14 = vld [vmem:[#allocation4 + $0x20] sm:$0xff]  ;;  %v108_v15 = vld [vmem:[#allocation4 + $0x18] sm:$0xff]  ;;  %v107_v16 = vld [vmem:[#allocation4 + $0x10] sm:$0xff] }
  0x13   :  { %127 = vmatpush.msra.mxu1 %v118_v5  ;;  %v106_v17 = vld [vmem:[#allocation4 + $0x8] sm:$0xff]  ;;  %v105_v18 = vld [vmem:[#allocation4] sm:$0xff]  ;;  %v161_v19 = vld [vmem:[#allocation6 + $0x78] sm:$0xff] }
  0x14   :  { %v160_v20 = vld [vmem:[#allocation6 + $0x70] sm:$0xff]  ;;  %166 = vmatpush.msra.mxu2 %v161_v19  ;;  %v159_v21 = vld [vmem:[#allocation6 + $0x68] sm:$0xff]  ;;  %v158_v22 = vld [vmem:[#allocation6 + $0x60] sm:$0xff] }
  0x15   :  { %128 = vmatpush.msra.mxu1 %v117_v6  ;;  %v157_v23 = vld [vmem:[#allocation6 + $0x58] sm:$0xff]  ;;  %v156_v24 = vld [vmem:[#allocation6 + $0x50] sm:$0xff]  ;;  %v155_v25 = vld [vmem:[#allocation6 + $0x48] sm:$0xff] }
  0x16   :  { %167 = vmatpush.msra.mxu2 %v160_v20  ;;  %v154_v26 = vld [vmem:[#allocation6 + $0x40] sm:$0xff]  ;;  %v153_v27 = vld [vmem:[#allocation6 + $0x38] sm:$0xff]  ;;  %v152_v28 = vld [vmem:[#allocation6 + $0x30] sm:$0xff] }
  0x17   :  { %129 = vmatpush.msra.mxu1 %v116_v7  ;;  %v151_v29 = vld [vmem:[#allocation6 + $0x28] sm:$0xff]  ;;  %v150_v30 = vld [vmem:[#allocation6 + $0x20] sm:$0xff]  ;;  %v149_v31 = vld [vmem:[#allocation6 + $0x18] sm:$0xff] }
  0x18   :  { %168 = vmatpush.msra.mxu2 %v159_v21  ;;  %v199_v32 = vld [vmem:[%s349_s2] ss:$0 sm:$0xff]  ;;  %v147_v37 = vld [vmem:[#allocation6 + $0x8] sm:$0xff]  ;;  %v146_v38 = vld [vmem:[#allocation6] sm:$0xff] }
  0x19   :  { %130 = vmatpush.msra.mxu1 %v115_v8  ;;  %v148_v36 = vld [vmem:[#allocation6 + $0x10] sm:$0xff] }
  0x1a   :  { %169 = vmatpush.msra.mxu2 %v158_v22  ;;  %v200_v39 = vld [vmem:[%s351_s4] ss:$0 sm:$0xff] }
  0x1b   :  { %131 = vmatpush.msra.mxu1 %v114_v9  ;;  %v201_v43 = vld [vmem:[%s353_s6] ss:$0 sm:$0xff] }
  0x1c   :  { %170 = vmatpush.msra.mxu2 %v157_v23 }
  0x1d   :  { %132 = vmatpush.msra.mxu1 %v113_v10 }
  0x1e   :  { %171 = vmatpush.msra.mxu2 %v156_v24 }
  0x1f   :  { %133 = vmatpush.msra.mxu1 %v112_v11 }
  0x20   :  { %172 = vmatpush.msra.mxu2 %v155_v25 }
  0x21   :  { %134 = vmatpush.msra.mxu1 %v111_v12 }
  0x22   :  { %173 = vmatpush.msra.mxu2 %v154_v26 }
  0x23   :  { %135 = vmatpush.msra.mxu1 %v110_v13 }
  0x24   :  { %174 = vmatpush.msra.mxu2 %v153_v27 }
  0x25   :  { %136 = vmatpush.msra.mxu1 %v109_v14 }
  0x26   :  { %175 = vmatpush.msra.mxu2 %v152_v28 }
  0x27   :  { %137 = vmatpush.msra.mxu1 %v108_v15 }
  0x28   :  { %176 = vmatpush.msra.mxu2 %v151_v29 }
  0x29   :  { %138 = vmatpush.msra.mxu1 %v107_v16 }
  0x2a   :  { %177 = vmatpush.msra.mxu2 %v150_v30 }
  0x2b   :  { %139 = vmatpush.msra.mxu1 %v106_v17 }
  0x2c   :  { %178 = vmatpush.msra.mxu2 %v149_v31 }
  0x2d   :  { %140 = vmatpush.msra.mxu1 %v105_v18 }
  0x2e   :  { %179 = vmatpush.msra.mxu2 %v148_v36 }
  0x30   :  { %180 = vmatpush.msra.mxu2 %v147_v37 }
  0x32   :  { %181 = vmatpush.msra.mxu2 %v146_v38 }
  0x8e   :  { %v101_v33 = vpop.f32.mrf.mxu0 }
  0x8f   :  { %v102_v34 = vadd.f32 %v199_v32, %v101_v33 }
  0x91   :  { %v104_v35 = vmax.f32 %v102_v34, 0.0 }
  0x93   :  { %141 = vmatmul.f32.vlgmr.msra.gmra.mxu1 %v104_v35 }
 0x110   :  { %v142_v40 = vpop.f32.mrf.mxu1 }
 0x111   :  { %v143_v41 = vadd.f32 %v200_v39, %v142_v40 }
 0x113   :  { %v145_v42 = vmax.f32 %v143_v41, 0.0 }
 0x115   :  { %182 = vmatmul.f32.vlgmr.msra.gmra.mxu2 %v145_v42 }
 0x198   :  { %v183_v44 = vpop.f32.mrf.mxu2 }
 0x199   :  { %v184_v45 = vadd.f32 %v201_v43, %v183_v44 }
 0x19b   :  { %186 = vst [vmem:[%s354_s7] sm:$0xff] %v184_v45 }
 0x19c   :  { %191 = vsyncpa [#allocation3], 1 }
 0x19d   :  { %192 = vsyncpa [#allocation5], 1 }

</bundles_post_ra>
